<compile_context>
chip_gen: v6e
topology: v6e:2x2x1
jax: 0.10.0
libtpu: 0.0.40
codegen_flags: <defaults>
</compile_context>

<pallas_src>
import jax
import jax.numpy as jnp
from jax.experimental import pallas as pl
from jax.experimental.pallas import tpu as pltpu

D = 2                  # matches the module's `d`
LANES = 128            # vreg lane width
MAX_TILE_ROWS = 4096   # 4096 * 128 * 4 B = 2 MiB per f32 block


def _round_up(x, m):
    return ((x + m - 1) // m) * m


def mvn_icdf_kernel(u_ref, param_ref, o_ref):
    """o = ndtri(u) * sqrt(sigma) + mu on a lane-dense (tile_rows, 128) slab.

    ndtri(u) = sqrt(2) * erfinv(2u - 1) with Giles' single-precision erfinv
    (branch-merged: coefficients selected per element, one shared degree-8
    Horner chain).  The sqrt(2) factor and the diagonal-Cholesky factor
    sqrt(sigma) are pre-folded into param row 0, so the epilogue is one FMA.

    Note: u extremely close to 0/1 is clamped to a large finite value instead
    of torch's +/-inf (fine for this module's (0.01, 0.99) usage).
    """
    u = u_ref[...]
    x = 2.0 * u - 1.0
    # w = -log((1 - x)(1 + x)) = -log(4 u (1 - u)); clamp keeps the log finite.
    w = -jnp.log(jnp.maximum((1.0 - x) * (1.0 + x), 1e-38))
    central = w < 5.0
    ws = jnp.where(central, w - 2.5, jnp.sqrt(w) - 3.0)

    def sel(cc, ct):  # per-element coefficient selection (1 vselect each)
        return jnp.where(central, cc, ct)

    p = sel(2.81022636e-08, -2.00214257e-04)
    p = sel(3.43273939e-07, 1.00950558e-04) + p * ws
    p = sel(-3.52338770e-06, 1.34934322e-03) + p * ws
    p = sel(-4.39150654e-06, -3.67342844e-03) + p * ws
    p = sel(2.18580870e-04, 5.73950773e-03) + p * ws
    p = sel(-1.25372503e-03, -7.62246130e-03) + p * ws
    p = sel(-4.17768164e-03, 9.43887047e-03) + p * ws
    p = sel(2.46640727e-01, 1.00167406e+00) + p * ws
    p = sel(1.50140941e+00, 2.83297682e+00) + p * ws

    erfinv = x * p
    scale = param_ref[0:1, :]   # sqrt(2) * sqrt(sigma), lane-tiled
    mu = param_ref[1:2, :]
    o_ref[...] = erfinv * scale + mu


def generator_location_forward(u, mu, sigma):
    """JAX/Pallas equivalent of Generator_location.forward(u)."""
    n, d = u.shape
    assert d == D

    # Sigma = diag(sigma)  =>  cholesky(Sigma).T = diag(sqrt(sigma)):
    # z @ L.T is an elementwise scale.  Fold ndtri's sqrt(2) into it too.
    scale = jnp.sqrt(2.0 * sigma.astype(jnp.float32))

    # One resident (2, 128) parameter block; column j <-> dimension (j % D).
    reps = LANES // D
    params = jnp.stack(
        [jnp.tile(scale, reps), jnp.tile(mu.astype(jnp.float32), reps)])

    # Lane-dense relayout: flatten row-major (free) and view as (rows, 128).
    flat = u.astype(jnp.float32).reshape(-1)
    total = flat.shape[0]
    rows = -(-total // LANES)
    tail = rows * LANES - total
    if tail:
        # Only a sub-vreg (<128 elem) tail is ever padded; when total % 128 == 0
        # there is no pad and no output slice (zero extra HBM passes).
        flat = jnp.concatenate([flat, jnp.full((tail,), 0.5, jnp.float32)])
    slab = flat.reshape(rows, LANES)

    # Tile height: large blocks to amortize per-step overhead, but keep >=4
    # grid steps when possible (DMA/compute overlap; both v7x TCs busy).
    if rows <= 8:
        tile_rows = rows                                  # single full block
    else:
        tile_rows = min(MAX_TILE_ROWS, _round_up(-(-rows // 4), 8))
    grid = (-(-rows // tile_rows),)

    out = pl.pallas_call(
        mvn_icdf_kernel,
        out_shape=jax.ShapeDtypeStruct((rows, LANES), jnp.float32),
        grid=grid,
        in_specs=[
            pl.BlockSpec((tile_rows, LANES), lambda i: (i, 0)),  # u slab (tiled)
            pl.BlockSpec((2, LANES), lambda i: (0, 0)),          # params (resident)
        ],
        out_specs=pl.BlockSpec((tile_rows, LANES), lambda i: (i, 0)),
        compiler_params=pltpu.CompilerParams(
            dimension_semantics=("parallel",)),
    )(slab, params)

    if tail:
        return out.reshape(-1)[:total].reshape(n, d)
    return out.reshape(n, d)


if __name__ == "__main__":
    key = jax.random.PRNGKey(0)
    n = 8
    # u must lie in (0, 1) for the inverse CDF (as in the PyTorch usage).
    u = jax.random.uniform(key, (n, D), dtype=jnp.float32, minval=0.01, maxval=0.99)

    # Deterministic parameter init exactly as the module's __init__:
    mu = 2.0 * jnp.ones((D,), jnp.float32)
    sigma = 3.0 * jnp.ones((D,), jnp.float32)

    out = generator_location_forward(u, mu, sigma)
    out = jax.block_until_ready(out)

    # Pure-JAX reference mirroring the torch module (cholesky of diag(sigma)).
    L = jnp.linalg.cholesky(jnp.diag(sigma))
    ref = mu.reshape(1, D) + jax.scipy.special.ndtri(u) @ L.T
    assert float(jnp.max(jnp.abs(out - ref))) < 1e-3, "mismatch vs reference"

    print("KERNEL_OK")
</pallas_src>

<mosaic_0001>
module attributes {stable_mosaic.version = 11 : i64} {
  func.func @mvn_icdf_kernel(%arg0: i32, %arg1: memref<1x128xf32, #tpu.memory_space<vmem>>, %arg2: memref<2x128xf32, #tpu.memory_space<vmem>>, %arg3: memref<1x128xf32, #tpu.memory_space<vmem>>) attributes {dimension_semantics = [#tpu.dimension_semantics<parallel>], iteration_bounds = array<i64: 1>, scalar_prefetch = 0 : i64, scratch_operands = 0 : i64, tpu.core_type = #tpu.core_type<tc>, window_params = [{transform_indices = @transform_0, window_bounds = array<i64: 1, 128>}, {pipeline_mode = #tpu.pipeline_mode<synchronous>, transform_indices = @transform_1, window_bounds = array<i64: 2, 128>}, {transform_indices = @transform_2, window_bounds = array<i64: 1, 128>}]} {
    %c0 = arith.constant 0 : index
    %c0_0 = arith.constant 0 : index
    %0 = vector.load %arg1[%c0, %c0_0] : memref<1x128xf32, #tpu.memory_space<vmem>>, vector<1x128xf32>
    %cst = arith.constant 2.000000e+00 : f32
    %1 = vector.broadcast %cst : f32 to vector<1x128xf32>
    %2 = arith.mulf %1, %0 : vector<1x128xf32>
    %cst_1 = arith.constant 1.000000e+00 : f32
    %3 = vector.broadcast %cst_1 : f32 to vector<1x128xf32>
    %4 = arith.subf %2, %3 : vector<1x128xf32>
    %cst_2 = arith.constant 1.000000e+00 : f32
    %5 = vector.broadcast %cst_2 : f32 to vector<1x128xf32>
    %6 = arith.subf %5, %4 : vector<1x128xf32>
    %cst_3 = arith.constant 1.000000e+00 : f32
    %7 = vector.broadcast %cst_3 : f32 to vector<1x128xf32>
    %8 = arith.addf %7, %4 : vector<1x128xf32>
    %9 = arith.mulf %6, %8 : vector<1x128xf32>
    %cst_4 = arith.constant 9.99999935E-39 : f32
    %10 = vector.broadcast %cst_4 : f32 to vector<1x128xf32>
    %11 = arith.maximumf %9, %10 : vector<1x128xf32>
    %12 = math.log %11 : vector<1x128xf32>
    %cst_5 = arith.constant 0.000000e+00 : f32
    %13 = vector.broadcast %cst_5 : f32 to vector<1x128xf32>
    %14 = arith.subf %13, %12 : vector<1x128xf32>
    %cst_6 = arith.constant 5.000000e+00 : f32
    %15 = vector.broadcast %cst_6 : f32 to vector<1x128xf32>
    %16 = arith.cmpf olt, %14, %15 : vector<1x128xf32>
    %cst_7 = arith.constant 2.500000e+00 : f32
    %17 = vector.broadcast %cst_7 : f32 to vector<1x128xf32>
    %18 = arith.subf %14, %17 : vector<1x128xf32>
    %19 = math.sqrt %14 : vector<1x128xf32>
    %cst_8 = arith.constant 3.000000e+00 : f32
    %20 = vector.broadcast %cst_8 : f32 to vector<1x128xf32>
    %21 = arith.subf %19, %20 : vector<1x128xf32>
    %22 = arith.select %16, %18, %21 : vector<1x128xi1>, vector<1x128xf32>
    %cst_9 = arith.constant 2.81022636E-8 : f32
    %cst_10 = arith.constant -2.00214257E-4 : f32
    %23 = vector.broadcast %cst_9 : f32 to vector<1x128xf32>
    %24 = vector.broadcast %cst_10 : f32 to vector<1x128xf32>
    %25 = arith.select %16, %23, %24 : vector<1x128xi1>, vector<1x128xf32>
    %cst_11 = arith.constant 3.43273939E-7 : f32
    %cst_12 = arith.constant 1.00950558E-4 : f32
    %26 = vector.broadcast %cst_11 : f32 to vector<1x128xf32>
    %27 = vector.broadcast %cst_12 : f32 to vector<1x128xf32>
    %28 = arith.select %16, %26, %27 : vector<1x128xi1>, vector<1x128xf32>
    %29 = arith.mulf %25, %22 : vector<1x128xf32>
    %30 = arith.addf %28, %29 : vector<1x128xf32>
    %cst_13 = arith.constant -3.5233877E-6 : f32
    %cst_14 = arith.constant 0.00134934322 : f32
    %31 = vector.broadcast %cst_13 : f32 to vector<1x128xf32>
    %32 = vector.broadcast %cst_14 : f32 to vector<1x128xf32>
    %33 = arith.select %16, %31, %32 : vector<1x128xi1>, vector<1x128xf32>
    %34 = arith.mulf %30, %22 : vector<1x128xf32>
    %35 = arith.addf %33, %34 : vector<1x128xf32>
    %cst_15 = arith.constant -4.39150654E-6 : f32
    %cst_16 = arith.constant -0.00367342844 : f32
    %36 = vector.broadcast %cst_15 : f32 to vector<1x128xf32>
    %37 = vector.broadcast %cst_16 : f32 to vector<1x128xf32>
    %38 = arith.select %16, %36, %37 : vector<1x128xi1>, vector<1x128xf32>
    %39 = arith.mulf %35, %22 : vector<1x128xf32>
    %40 = arith.addf %38, %39 : vector<1x128xf32>
    %cst_17 = arith.constant 2.1858087E-4 : f32
    %cst_18 = arith.constant 0.00573950773 : f32
    %41 = vector.broadcast %cst_17 : f32 to vector<1x128xf32>
    %42 = vector.broadcast %cst_18 : f32 to vector<1x128xf32>
    %43 = arith.select %16, %41, %42 : vector<1x128xi1>, vector<1x128xf32>
    %44 = arith.mulf %40, %22 : vector<1x128xf32>
    %45 = arith.addf %43, %44 : vector<1x128xf32>
    %cst_19 = arith.constant -0.00125372503 : f32
    %cst_20 = arith.constant -0.0076224613 : f32
    %46 = vector.broadcast %cst_19 : f32 to vector<1x128xf32>
    %47 = vector.broadcast %cst_20 : f32 to vector<1x128xf32>
    %48 = arith.select %16, %46, %47 : vector<1x128xi1>, vector<1x128xf32>
    %49 = arith.mulf %45, %22 : vector<1x128xf32>
    %50 = arith.addf %48, %49 : vector<1x128xf32>
    %cst_21 = arith.constant -0.00417768164 : f32
    %cst_22 = arith.constant 0.00943887047 : f32
    %51 = vector.broadcast %cst_21 : f32 to vector<1x128xf32>
    %52 = vector.broadcast %cst_22 : f32 to vector<1x128xf32>
    %53 = arith.select %16, %51, %52 : vector<1x128xi1>, vector<1x128xf32>
    %54 = arith.mulf %50, %22 : vector<1x128xf32>
    %55 = arith.addf %53, %54 : vector<1x128xf32>
    %cst_23 = arith.constant 0.246640727 : f32
    %cst_24 = arith.constant 1.00167406 : f32
    %56 = vector.broadcast %cst_23 : f32 to vector<1x128xf32>
    %57 = vector.broadcast %cst_24 : f32 to vector<1x128xf32>
    %58 = arith.select %16, %56, %57 : vector<1x128xi1>, vector<1x128xf32>
    %59 = arith.mulf %55, %22 : vector<1x128xf32>
    %60 = arith.addf %58, %59 : vector<1x128xf32>
    %cst_25 = arith.constant 1.50140941 : f32
    %cst_26 = arith.constant 2.83297682 : f32
    %61 = vector.broadcast %cst_25 : f32 to vector<1x128xf32>
    %62 = vector.broadcast %cst_26 : f32 to vector<1x128xf32>
    %63 = arith.select %16, %61, %62 : vector<1x128xi1>, vector<1x128xf32>
    %64 = arith.mulf %60, %22 : vector<1x128xf32>
    %65 = arith.addf %63, %64 : vector<1x128xf32>
    %66 = arith.mulf %4, %65 : vector<1x128xf32>
    %c0_27 = arith.constant 0 : index
    %c0_28 = arith.constant 0 : index
    %67 = vector.load %arg2[%c0_27, %c0_28] : memref<2x128xf32, #tpu.memory_space<vmem>>, vector<1x128xf32>
    %c1 = arith.constant 1 : index
    %c0_29 = arith.constant 0 : index
    %68 = vector.load %arg2[%c1, %c0_29] : memref<2x128xf32, #tpu.memory_space<vmem>>, vector<1x128xf32>
    %69 = arith.mulf %66, %67 : vector<1x128xf32>
    %70 = arith.addf %69, %68 : vector<1x128xf32>
    %c0_30 = arith.constant 0 : index
    %c0_31 = arith.constant 0 : index
    %71 = vector.load %arg3[%c0_30, %c0_31] : memref<1x128xf32, #tpu.memory_space<vmem>>, vector<1x128xf32>
    tpu.vector_store %arg3[%c0_30, %c0_31], %70 {strides = array<i32>} : memref<1x128xf32, #tpu.memory_space<vmem>>, vector<1x128xf32>,
    return
  }
  func.func @transform_0(%arg0: i32) -> (i32, i32) {
    %c0_i32 = arith.constant 0 : i32
    %c0_i32_0 = arith.constant 0 : i32
    return %arg0, %c0_i32 : i32, i32
  }
  func.func @transform_1(%arg0: i32) -> (i32, i32) {
    %c0_i32 = arith.constant 0 : i32
    %c0_i32_0 = arith.constant 0 : i32
    %c0_i32_1 = arith.constant 0 : i32
    return %c0_i32, %c0_i32_0 : i32, i32
  }
  func.func @transform_2(%arg0: i32) -> (i32, i32) {
    %c0_i32 = arith.constant 0 : i32
    %c0_i32_0 = arith.constant 0 : i32
    return %arg0, %c0_i32 : i32, i32
  }
}

</mosaic_0001>

<bundles_post_ra>
// kernel: tpu_custom_call.1
= control target key start
LH: loop header
LB: loop body
LE: loop exit
PB: predicated region body
PF: predicated region fallthrough
CT: control target
= control target key end

     0   :  { %7 = vsyncpa [#allocation3], 0  ;;  %s235_s0 = inlined_call_operand.hbm [shape: f32[1,128], index: 0, kind: input, shape index: {}]   ;;  %s236_s1 = inlined_call_operand.hbm [shape: f32[2,128], index: 1, kind: input, shape index: {}]   ;;  %s237_s2 = inlined_call_operand.hbm [shape: f32[1,128], index: 2, kind: output, shape index: {}]  }
   0x1   :  { %8 = vsyncpa [#allocation6], 0 }
   0x2   :  { %9 = vsyncpa [#allocation4], 0  ;;  %s189_s9 = smov [#allocation2]   ;;  %s190_s11 = smov [#allocation5]  }
   0x3   :  { %s16_s10 = sshll.u32 %s189_s9, 4  ;;  %s26_s12 = sshll.u32 %s190_s11, 4  ;;  %s17_s10 = int_to_ptr.vmem [resolvable:$true] %s16_s10  ;;  %s27_s12 = int_to_ptr.vmem [resolvable:$true] %s26_s12 }
   0x4   :  { %s131_s13 = scalar_lea.vmem %s17_s10, 16  ;;  %s135_s14 = scalar_lea.vmem %s17_s10, 32 }
   0x5   :  { %p132_p0 = scmp.ne.s32.totalorder %s17_s10, %s131_s13  ;;  %p136_p1 = scmp.lt.s32.totalorder %s17_s10, %s17_s10 }
   0x6   :  { %p137_p2 = scmp.lt.s32.totalorder %s135_s14, %s131_s13 }
   0x8   :  { %p138_p3 = por %p137_p2, %p136_p1 }
   0xa   :  { %p139_p4 = pnand %p138_p3, %p132_p0 }
   0xc   :  { %142 = shalt.err (!%p139_p4)
}
   0xd   :  { %19 = dma.hbm_to_vmem [thread:$0]  %s235_s0, 16, %s17_s10, [#allocation3]  }
   0xe   :  { %s151_s17 = scalar_lea.vmem %s27_s12, 32  ;;  %p156_p6 = scmp.lt.s32.totalorder %s27_s12, %s27_s12 }
   0xf   :  { %p152_p5 = scmp.ne.s32.totalorder %s27_s12, %s151_s17  ;;  %p157_p7 = scmp.lt.s32.totalorder %s151_s17, %s151_s17 }
  0x11   :  { %p158_p8 = por %p157_p7, %p156_p6 }
  0x13   :  { %p159_p9 = pnand %p158_p8, %p152_p5 }
  0x15   :  { %162 = shalt.err (!%p159_p9)
}
  0x16   :  { %29 = dma.hbm_to_vmem [thread:$0]  %s236_s1, 32, %s27_s12, [#allocation6]  }
  0x17   :  { %183 = dma.done.wait [#allocation3], 16  }
  0x18   :  { %184 = vsyncadd [#allocation3], 4294967280 }
  0x19   :  { %185 = dma.done.wait [#allocation6], 32  }
  0x1a   :  { %186 = vsyncadd [#allocation6], 4294967264  ;;  %v36_v0 = vld [vmem:[#allocation2] sm:$0x1]  ;;  %v191_v17 = vmov -0.00020021426  }
  0x1b   :  { %v37_v1 = vmul.f32 2.0, %v36_v0  ;;  %v192_v20 = vmov 0.00010095056   ;;  %v193_v24 = vmov 0.0013493432   ;;  %s200_s0 = smov [#allocation7]  }
  0x1c   :  { %v194_v28 = vmov -0.0036734284   ;;  %v195_v32 = vmov 0.0057395077   ;;  %v196_v36 = vmov -0.0076224613  }
  0x1d   :  { %v104_v2 = vadd.f32 -1.0, %v37_v1  ;;  %v197_v40 = vmov 0.0094388705   ;;  %v198_v44 = vmov 1.001674   ;;  %s94_s1 = sshll.u32 %s200_s0, 4  ;;  %s95_s1 = int_to_ptr.vmem [resolvable:$true] %s94_s1 }
  0x1e   :  { %v199_v48 = vmov 2.8329768   ;;  %v83_v52 = vld [vmem:[#allocation5] sm:$0x1]  ;;  %v84_v54 = vld [vmem:[#allocation5 + $0x1] sm:$0x1]  ;;  %p168_p11 = scmp.lt.s32.totalorder %s95_s1, %s95_s1 }
  0x1f   :  { %v39_v3 = vsub.f32 1.0, %v104_v2  ;;  %v40_v4 = vadd.f32 1.0, %v104_v2  ;;  %s163_s20 = scalar_lea.vmem %s95_s1, 16  ;;  %s167_s21 = scalar_lea.vmem %s95_s1, 32 }
  0x20   :  { %p164_p10 = scmp.ne.s32.totalorder %s95_s1, %s163_s20  ;;  %p169_p12 = scmp.lt.s32.totalorder %s167_s21, %s163_s20 }
  0x21   :  { %v41_v5 = vmul.f32 %v40_v4, %v39_v3 }
  0x22   :  { %p170_p13 = por %p169_p12, %p168_p11 }
  0x23   :  { %v42_v6 = vmax.f32 %v41_v5, 1e-38 }
  0x24   :  { %p171_p0 = pnand %p170_p13, %p164_p10 }
  0x25   :  { %119 = vlog2.f32 %v42_v6 }
  0x32   :  { %v120_v7 = vpop.eup %119 }
  0x33   :  { %v44_v8 = vmul.f32 0.6931472, %v120_v7 }
  0x35   :  { %v45_v9 = vsub.f32 0.0, %v44_v8 }
  0x37   :  { %121 = vrsqrt.f32 %v45_v9  ;;  %vm50_vm0 = vcmp.eq.f32.partialorder %v45_v9, inf  ;;  %v53_v11 = vand.u32 2147483648, %v45_v9  ;;  %vm52_vm1 = vcmp.eq.f32.partialorder %v45_v9, 0.0 }
  0x38   :  { %vm46_vm2 = vcmp.lt.f32.partialorder %v45_v9, 5.0  ;;  %v105_v13 = vadd.f32 -2.5, %v45_v9 }
  0x39   :  { %v57_v18 = vsel %vm46_vm2, 2.8102264e-08, %v191_v17  ;;  %v58_v21 = vsel %vm46_vm2, 3.4327394e-07, %v192_v20  ;;  %v61_v25 = vsel %vm46_vm2, -3.5233877e-06, %v193_v24 }
  0x3a   :  { %v64_v29 = vsel %vm46_vm2, -4.3915065e-06, %v194_v28  ;;  %v67_v33 = vsel %vm46_vm2, 0.00021858087, %v195_v32  ;;  %v70_v37 = vsel %vm46_vm2, -0.001253725, %v196_v36 }
  0x3b   :  { %v73_v41 = vsel %vm46_vm2, -0.0041776816, %v197_v40  ;;  %v76_v45 = vsel %vm46_vm2, 0.24664073, %v198_v44  ;;  %v79_v49 = vsel %vm46_vm2, 1.5014094, %v199_v48 }
  0x44   :  { %v122_v10 = vpop.eup %121 }
  0x45   :  { %v49_v12 = vmul.f32 %v122_v10, %v45_v9 }
  0x47   :  { %v51_v14 = vsel %vm50_vm0, %v45_v9, %v49_v12 }
  0x48   :  { %v54_v15 = vsel %vm52_vm1, %v53_v11, %v51_v14 }
  0x49   :  { %v106_v16 = vadd.f32 -3.0, %v54_v15 }
  0x4b   :  { %v56_v19 = vsel %vm46_vm2, %v105_v13, %v106_v16 }
  0x4c   :  { %v59_v22 = vmul.f32 %v57_v18, %v56_v19 }
  0x4e   :  { %v60_v23 = vadd.f32 %v59_v22, %v58_v21 }
  0x50   :  { %v62_v26 = vmul.f32 %v60_v23, %v56_v19 }
  0x52   :  { %v63_v27 = vadd.f32 %v62_v26, %v61_v25 }
  0x54   :  { %v65_v30 = vmul.f32 %v63_v27, %v56_v19 }
  0x56   :  { %v66_v31 = vadd.f32 %v65_v30, %v64_v29 }
  0x58   :  { %v68_v34 = vmul.f32 %v66_v31, %v56_v19 }
  0x5a   :  { %v69_v35 = vadd.f32 %v68_v34, %v67_v33 }
  0x5c   :  { %v71_v38 = vmul.f32 %v69_v35, %v56_v19 }
  0x5e   :  { %v72_v39 = vadd.f32 %v71_v38, %v70_v37 }
  0x60   :  { %v74_v42 = vmul.f32 %v72_v39, %v56_v19 }
  0x62   :  { %v75_v43 = vadd.f32 %v74_v42, %v73_v41 }
  0x64   :  { %v77_v46 = vmul.f32 %v75_v43, %v56_v19 }
  0x66   :  { %v78_v47 = vadd.f32 %v77_v46, %v76_v45 }
  0x68   :  { %v80_v50 = vmul.f32 %v78_v47, %v56_v19 }
  0x6a   :  { %v81_v51 = vadd.f32 %v80_v50, %v79_v49 }
  0x6c   :  { %v82_v53 = vmul.f32 %v104_v2, %v81_v51 }
  0x6e   :  { %v85_v55 = vmul.f32 %v83_v52, %v82_v53 }
  0x70   :  { %v86_v56 = vadd.f32 %v85_v55, %v84_v54 }
  0x72   :  { %87 = vst [vmem:[#allocation7] sm:$0x1] %v86_v56 }
  0x73   :  { %174 = shalt.err (!%p171_p0)
}
  0x74   :  { %97 = dma.vmem_to_hbm [thread:$0]  %s95_s1, 16, %s237_s2, [#allocation4]  }
  0x75   :  { %187 = dma.done.wait [#allocation4], 16  }
  0x76   :  { %188 = vsyncadd [#allocation4], 4294967280 }
  0x77   :  { %101 = vsyncpa [#allocation3], 1 }
  0x78   :  { %102 = vsyncpa [#allocation6], 1 }
  0x79   :  { %103 = vsyncpa [#allocation4], 1 }

</bundles_post_ra>
